<compile_context>
chip_gen: v7x
topology: tpu7x:2x2x1
jax: 0.10.0
libtpu: 0.0.40
codegen_flags: <defaults>
</compile_context>

<pallas_src>
import jax
import jax.numpy as jnp
from jax.experimental import pallas as pl
from jax.experimental.pallas import tpu as pltpu

# ----------------------- problem sizes (small, synthetic) -----------------------
N = 2          # batch
C_IN = 3       # image channels
H = W = 16     # spatial
K = 3          # conv kernel size (padding=1, stride=1 -> same spatial size)
C_FEAT = 32    # feature channels (stand-in for ResNet50's 2048)
N_CLASSES = 8  # stand-in for checkpoint's fc output dim

WC = W * C_IN            # 48  : input row layout, columns ordered (w, c), c fastest
KWC = K * WC             # 144 : fused contraction dim (kh, w, c)
WF = W * C_FEAT          # 512 : conv row layout, columns ordered (w, f), f fastest
NH = N * H               # 32  : batched conv rows
OUT_ROWS, OUT_COLS = 8, 128   # lane-dense fused output slab


# ----------------------------- Pallas kernel -----------------------------------
def cnn_kernel(lhs_ref, band_ref, bconv_ref, psel_ref, head_ref, hbias_ref, out_ref):
    # lhs:   (N*H, K*W*C_IN)   batched, h-window-expanded input rows
    # band:  (K*W*C_IN, W*C_FEAT) fused banded conv weight (w-padding folded in)
    # bconv: (1, W*C_FEAT)     conv bias tiled per (w, f) column
    # psel:  (8, N*H)          block-diagonal 1/(H*W) pooling selector (rows >= N are 0)
    # head:  (W*C_FEAT, 128)   fused pool->feat | pool->fc columns, zero padded
    # hbias: (1, 128)          fused bias row: [0 ... | bfc | 0]
    # out:   (8, 128)          rows 0:N -> [feat (0:32) | logits (32:40) | 0]
    conv = jnp.dot(lhs_ref[...], band_ref[...],
                   preferred_element_type=jnp.float32) + bconv_ref[...]   # (NH, WF)
    relu = jnp.maximum(conv, 0.0)
    pooled = jnp.dot(psel_ref[...], relu,
                     preferred_element_type=jnp.float32)                  # (8, WF)
    out_ref[...] = jnp.dot(pooled, head_ref[...],
                           preferred_element_type=jnp.float32) + hbias_ref[...]


# ------------------------------ weight prep (once) ------------------------------
def prepare_weights(wconv, bconv, wfc, bfc):
    """Weight-only prep.  Depends only on the checkpoint; compute once, reuse."""
    wconv = wconv.astype(jnp.float32)

    # Banded conv weight: band[kh, (w_in, c), (w_out, f)] = wconv[f, c, kh, w_in - w_out + 1]
    # (out-of-range w taps are simply absent -> implements the w padding).
    band_sel = jnp.stack([jnp.eye(W, k=1 - kw, dtype=jnp.float32) for kw in range(K)])
    band = jnp.einsum("kvw,fchk->hvcwf", band_sel, wconv)         # (K, W, C_IN, W, C_FEAT)
    band = band.reshape(KWC, WF)                                  # fused (kh, w, c) contraction

    bconv_row = jnp.tile(bconv.astype(jnp.float32), (W,)).reshape(1, WF)

    # Block-diagonal pooling selector: pooled[n, (w,f)] = (1/(H*W)) * sum_h relu[(n,h),(w,f)]
    psel = jnp.zeros((OUT_ROWS, NH), dtype=jnp.float32)
    for n in range(N):
        psel = psel.at[n, n * H:(n + 1) * H].set(1.0 / (H * W))

    # Fused lane-dense head: cols 0:32 sum the w groups -> feat, cols 32:40 -> logits.
    csel = jnp.tile(jnp.eye(C_FEAT, dtype=jnp.float32), (W, 1))   # (WF, C_FEAT)
    wfc_t = wfc.astype(jnp.float32).T                             # (C_FEAT, N_CLASSES)
    head = jnp.zeros((WF, OUT_COLS), dtype=jnp.float32)
    head = head.at[:, 0:C_FEAT].set(csel)
    head = head.at[:, C_FEAT:C_FEAT + N_CLASSES].set(csel @ wfc_t)

    hbias = jnp.zeros((1, OUT_COLS), dtype=jnp.float32)
    hbias = hbias.at[0, C_FEAT:C_FEAT + N_CLASSES].set(bfc.astype(jnp.float32))

    return tuple(jax.device_put(a) for a in (band, bconv_row, psel, head, hbias))


# ------------------------------ forward -----------------------------------------
def _prep_input(x_nchw):
    """Cheap per-call input relayout: (N,C,H,W) -> (N*H, K*W*C) h-window rows."""
    x = jnp.transpose(x_nchw.astype(jnp.float32), (0, 2, 3, 1))   # (N, H, W, C)
    x = jnp.pad(x, ((0, 0), (1, 1), (0, 0), (0, 0)))              # pad h only
    windows = jnp.stack([x[:, kh:kh + H] for kh in range(K)], axis=2)   # (N, H, K, W, C)
    return windows.reshape(NH, KWC)


def cnn_model_forward(x_nchw, prepared):
    """Mirror of CNNModel.forward: returns (features, logits)."""
    band, bconv_row, psel, head, hbias = prepared
    lhs = _prep_input(x_nchw)

    flops = 2 * (NH * KWC * WF + OUT_ROWS * NH * WF + OUT_ROWS * WF * OUT_COLS)
    bytes_accessed = 4 * (lhs.size + band.size + bconv_row.size + psel.size
                          + head.size + hbias.size + OUT_ROWS * OUT_COLS)

    vmem = pl.BlockSpec(memory_space=pltpu.MemorySpace.VMEM)
    # No grid: single invocation -- per-step grid overhead would dominate at this size.
    slab = pl.pallas_call(
        cnn_kernel,
        out_shape=jax.ShapeDtypeStruct((OUT_ROWS, OUT_COLS), jnp.float32),
        in_specs=[vmem] * 6,
        out_specs=vmem,
        compiler_params=pltpu.CompilerParams(vmem_limit_bytes=8 * 1024 * 1024),
        cost_estimate=pl.CostEstimate(flops=flops, transcendentals=0,
                                      bytes_accessed=bytes_accessed),
    )(lhs, band, bconv_row, psel, head, hbias)

    feat = slab[0:N, 0:C_FEAT]                                    # x.view(x.size(0), -1)
    logits = slab[0:N, C_FEAT:C_FEAT + N_CLASSES]                 # y = self.logits(x)
    return feat, logits


# ------------------------------ reference ----------------------------------------
def reference_forward(x_nchw, wconv, bconv, wfc, bfc):
    conv = jax.lax.conv_general_dilated(
        x_nchw.astype(jnp.float32), wconv,
        window_strides=(1, 1), padding=((1, 1), (1, 1)),
        dimension_numbers=("NCHW", "OIHW", "NCHW"),
    ) + bconv.reshape(1, C_FEAT, 1, 1)
    conv = jnp.maximum(conv, 0.0)
    feat = jnp.mean(conv, axis=(2, 3))                            # adaptive avg pool -> (N, C_FEAT)
    logits = feat @ wfc.T + bfc
    return feat, logits


# ------------------------------ main ----------------------------------------------
if __name__ == "__main__":
    key = jax.random.PRNGKey(0)
    kx, kw1, kb1, kw2, kb2 = jax.random.split(key, 5)

    x = jax.random.normal(kx, (N, C_IN, H, W), dtype=jnp.float32)
    wconv = jax.random.normal(kw1, (C_FEAT, C_IN, K, K), dtype=jnp.float32) * 0.1
    bconv = jax.random.normal(kb1, (C_FEAT,), dtype=jnp.float32) * 0.1
    wfc = jax.random.normal(kw2, (N_CLASSES, C_FEAT), dtype=jnp.float32) * 0.1
    bfc = jax.random.normal(kb2, (N_CLASSES,), dtype=jnp.float32) * 0.1

    # Weight-only prep is done exactly once (checkpoint-derived constants).
    prepared = prepare_weights(wconv, bconv, wfc, bfc)
    jax.block_until_ready(prepared)

    forward = jax.jit(lambda inp: cnn_model_forward(inp, prepared))
    feat, logits = forward(x)
    jax.block_until_ready((feat, logits))

    feat_ref, logits_ref = reference_forward(x, wconv, bconv, wfc, bfc)
    assert feat.shape == (N, C_FEAT) and logits.shape == (N, N_CLASSES)
    assert jnp.allclose(feat, feat_ref, atol=1e-4, rtol=1e-4)
    assert jnp.allclose(logits, logits_ref, atol=1e-4, rtol=1e-4)

    print("KERNEL_OK")
</pallas_src>

<mosaic_0001>
module attributes {stable_mosaic.version = 11 : i64} {
  func.func @cnn_kernel(%arg0: memref<32x144xf32, #tpu.memory_space<vmem>>, %arg1: memref<144x512xf32, #tpu.memory_space<vmem>>, %arg2: memref<1x512xf32, #tpu.memory_space<vmem>>, %arg3: memref<8x32xf32, #tpu.memory_space<vmem>>, %arg4: memref<512x128xf32, #tpu.memory_space<vmem>>, %arg5: memref<1x128xf32, #tpu.memory_space<vmem>>, %arg6: memref<8x128xf32, #tpu.memory_space<vmem>>) attributes {dimension_semantics = [], scalar_prefetch = 0 : i64, scratch_operands = 0 : i64, tpu.core_type = #tpu.core_type<tc>} {
    %c0 = arith.constant 0 : index
    %c0_0 = arith.constant 0 : index
    %0 = vector.load %arg0[%c0, %c0_0] : memref<32x144xf32, #tpu.memory_space<vmem>>, vector<32x144xf32>
    %c0_1 = arith.constant 0 : index
    %c0_2 = arith.constant 0 : index
    %1 = vector.load %arg1[%c0_1, %c0_2] : memref<144x512xf32, #tpu.memory_space<vmem>>, vector<144x512xf32>
    %cst = arith.constant dense<0.000000e+00> : vector<32x512xf32>
    %2 = tpu.matmul %0, %1, %cst {dimension_numbers = #tpu.dot_dimension_numbers<[1], [0], [0], [1], [0, 0, 1, 1], [], []>} : vector<32x144xf32>, vector<144x512xf32>, vector<32x512xf32> -> vector<32x512xf32>
    %c0_3 = arith.constant 0 : index
    %c0_4 = arith.constant 0 : index
    %3 = vector.load %arg2[%c0_3, %c0_4] : memref<1x512xf32, #tpu.memory_space<vmem>>, vector<1x512xf32>
    %4 = vector.broadcast %3 : vector<1x512xf32> to vector<32x512xf32>
    %5 = arith.addf %2, %4 : vector<32x512xf32>
    %cst_5 = arith.constant 0.000000e+00 : f32
    %6 = vector.broadcast %cst_5 : f32 to vector<32x512xf32>
    %7 = arith.maximumf %5, %6 : vector<32x512xf32>
    %c0_6 = arith.constant 0 : index
    %c0_7 = arith.constant 0 : index
    %8 = vector.load %arg3[%c0_6, %c0_7] : memref<8x32xf32, #tpu.memory_space<vmem>>, vector<8x32xf32>
    %cst_8 = arith.constant dense<0.000000e+00> : vector<8x512xf32>
    %9 = tpu.matmul %8, %7, %cst_8 {dimension_numbers = #tpu.dot_dimension_numbers<[1], [0], [0], [1], [0, 0, 1, 1], [], []>} : vector<8x32xf32>, vector<32x512xf32>, vector<8x512xf32> -> vector<8x512xf32>
    %c0_9 = arith.constant 0 : index
    %c0_10 = arith.constant 0 : index
    %10 = vector.load %arg4[%c0_9, %c0_10] : memref<512x128xf32, #tpu.memory_space<vmem>>, vector<512x128xf32>
    %cst_11 = arith.constant dense<0.000000e+00> : vector<8x128xf32>
    %11 = tpu.matmul %9, %10, %cst_11 {dimension_numbers = #tpu.dot_dimension_numbers<[1], [0], [0], [1], [0, 0, 1, 1], [], []>} : vector<8x512xf32>, vector<512x128xf32>, vector<8x128xf32> -> vector<8x128xf32>
    %c0_12 = arith.constant 0 : index
    %c0_13 = arith.constant 0 : index
    %12 = vector.load %arg5[%c0_12, %c0_13] : memref<1x128xf32, #tpu.memory_space<vmem>>, vector<1x128xf32>
    %13 = vector.broadcast %12 : vector<1x128xf32> to vector<8x128xf32>
    %14 = arith.addf %11, %13 : vector<8x128xf32>
    %c0_14 = arith.constant 0 : index
    %c0_15 = arith.constant 0 : index
    %15 = vector.load %arg6[%c0_14, %c0_15] : memref<8x128xf32, #tpu.memory_space<vmem>>, vector<8x128xf32>
    tpu.vector_store %arg6[%c0_14, %c0_15], %14 {strides = array<i32>} : memref<8x128xf32, #tpu.memory_space<vmem>>, vector<8x128xf32>,
    return
  }
}

</mosaic_0001>

<bundles_post_ra>
// kernel: _lambda_.1
= control target key start
LH: loop header
LB: loop body
LE: loop exit
PB: predicated region body
PF: predicated region fallthrough
CT: control target
= control target key end

     0   :  { %vm125_vm0 = vcmask 130048   ;;  %vm333_vm1 = vcmask 261120   ;;  %s1419_s1 = inlined_call_operand.vmem [shape: f32[144,512], index: 1, kind: input, shape index: {}]   ;;  %s1420_s0 = inlined_call_operand.vmem [shape: f32[32,144], index: 0, kind: input, shape index: {}]   ;;  %s1421_s2 = inlined_call_operand.vmem [shape: f32[1,512], index: 2, kind: input, shape index: {}]   ;;  %s1422_s4 = inlined_call_operand.vmem [shape: f32[512,128], index: 4, kind: input, shape index: {}]   ;;  %s1423_s3 = inlined_call_operand.vmem [shape: f32[8,32], index: 3, kind: input, shape index: {}]   ;;  %s1424_s5 = inlined_call_operand.vmem [shape: f32[1,128], index: 5, kind: input, shape index: {}]   ;;  %s1425_s6 = inlined_call_operand.vmem [shape: f32[8,128], index: 6, kind: output, shape index: {}]  }
   0x1   :  { %v32_v0 = vld [vmem:[%s1419_s1 + $0x8] sm:$0xff]  ;;  %v34_v2 = vld [vmem:[%s1419_s1 + $0x18] sm:$0xff]  ;;  %v31_v5 = vld [vmem:[%s1419_s1] sm:$0xff] }
   0x2   :  { %v36_v1 = vld [vmem:[%s1419_s1 + $0x28] sm:$0xff]  ;;  %v38_v4 = vld [vmem:[%s1419_s1 + $0x38] sm:$0xff]  ;;  %v35_v6 = vld [vmem:[%s1419_s1 + $0x20] sm:$0xff] }
   0x3   :  { %v776_v3 = vpack.c.bf16 %v36_v1, %v32_v0  ;;  %v812_v7 = vpack.c.bf16 %v38_v4, %v34_v2  ;;  %v778_v8 = vpack.c.bf16 %v35_v6, %v31_v5  ;;  %v33_v9 = vld [vmem:[%s1419_s1 + $0x10] sm:$0xff]  ;;  %v40_v11 = vld [vmem:[%s1419_s1 + $0x48] sm:$0xff]  ;;  %v42_v14 = vld [vmem:[%s1419_s1 + $0x58] sm:$0xff] }
   0x4   :  { %v37_v10 = vld [vmem:[%s1419_s1 + $0x30] sm:$0xff]  ;;  %v44_v13 = vld [vmem:[%s1419_s1 + $0x68] sm:$0xff]  ;;  %v46_v15 = vld [vmem:[%s1419_s1 + $0x78] sm:$0xff] }
   0x5   :  { %777 = vmatprep.subr.bf16.mxu0 %v776_v3  ;;  %v814_v12 = vpack.c.bf16 %v37_v10, %v33_v9  ;;  %813 = vmatprep.subr.bf16.mxu1 %v812_v7  ;;  %v780_v16 = vpack.c.bf16 %v44_v13, %v40_v11  ;;  %v816_v17 = vpack.c.bf16 %v46_v15, %v42_v14  ;;  %v39_v18 = vld [vmem:[%s1419_s1 + $0x40] sm:$0xff]  ;;  %v41_v20 = vld [vmem:[%s1419_s1 + $0x50] sm:$0xff]  ;;  %v48_v23 = vld [vmem:[%s1419_s1 + $0x88] sm:$0xff] }
   0x6   :  { %779 = vmatpush1.bf16.msra.mxu0 %v778_v8  ;;  %v43_v19 = vld [vmem:[%s1419_s1 + $0x60] sm:$0xff]  ;;  %v45_v22 = vld [vmem:[%s1419_s1 + $0x70] sm:$0xff]  ;;  %v52_v24 = vld [vmem:[%s1419_s1 + $0xa8] sm:$0xff] }
   0x7   :  { %815 = vmatpush1.bf16.msra.mxu1 %v814_v12  ;;  %v782_v21 = vpack.c.bf16 %v43_v19, %v39_v18  ;;  %781 = vmatprep.subr.bf16.mxu0 %v780_v16  ;;  %v818_v25 = vpack.c.bf16 %v45_v22, %v41_v20  ;;  %v784_v26 = vpack.c.bf16 %v52_v24, %v48_v23  ;;  %v50_v27 = vld [vmem:[%s1419_s1 + $0x98] sm:$0xff]  ;;  %v47_v29 = vld [vmem:[%s1419_s1 + $0x80] sm:$0xff]  ;;  %v49_v32 = vld [vmem:[%s1419_s1 + $0x90] sm:$0xff] }
   0x8   :  { %817 = vmatprep.subr.bf16.mxu1 %v816_v17  ;;  %v54_v28 = vld [vmem:[%s1419_s1 + $0xb8] sm:$0xff]  ;;  %v51_v31 = vld [vmem:[%s1419_s1 + $0xa0] sm:$0xff]  ;;  %v53_v33 = vld [vmem:[%s1419_s1 + $0xb0] sm:$0xff] }
   0x9   :  { %v820_v30 = vpack.c.bf16 %v54_v28, %v50_v27  ;;  %v786_v34 = vpack.c.bf16 %v51_v31, %v47_v29  ;;  %v56_v35 = vld [vmem:[%s1419_s1 + $0xc8] sm:$0xff]  ;;  %v58_v37 = vld [vmem:[%s1419_s1 + $0xd8] sm:$0xff]  ;;  %v822_v38 = vpack.c.bf16 %v53_v33, %v49_v32  ;;  %v55_v41 = vld [vmem:[%s1419_s1 + $0xc0] sm:$0xff] }
   0xa   :  { %783 = vmatpush1.bf16.msra.mxu0 %v782_v21  ;;  %v60_v36 = vld [vmem:[%s1419_s1 + $0xe8] sm:$0xff]  ;;  %v62_v40 = vld [vmem:[%s1419_s1 + $0xf8] sm:$0xff]  ;;  %v59_v42 = vld [vmem:[%s1419_s1 + $0xe0] sm:$0xff] }
   0xb   :  { %819 = vmatpush1.bf16.msra.mxu1 %v818_v25  ;;  %785 = vmatprep.subr.bf16.mxu0 %v784_v26  ;;  %v788_v39 = vpack.c.bf16 %v60_v36, %v56_v35  ;;  %v824_v43 = vpack.c.bf16 %v62_v40, %v58_v37  ;;  %v57_v44 = vld [vmem:[%s1419_s1 + $0xd0] sm:$0xff]  ;;  %v64_v46 = vld [vmem:[%s1419_s1 + $0x108] sm:$0xff]  ;;  %v66_v48 = vld [vmem:[%s1419_s1 + $0x118] sm:$0xff]  ;;  %v790_v50 = vpack.c.bf16 %v59_v42, %v55_v41 }
   0xc   :  { %821 = vmatprep.subr.bf16.mxu1 %v820_v30  ;;  %v61_v45 = vld [vmem:[%s1419_s1 + $0xf0] sm:$0xff]  ;;  %v68_v47 = vld [vmem:[%s1419_s1 + $0x128] sm:$0xff]  ;;  %v70_v49 = vld [vmem:[%s1419_s1 + $0x138] sm:$0xff] }
   0xd   :  { %v826_v51 = vpack.c.bf16 %v61_v45, %v57_v44  ;;  %v792_v52 = vpack.c.bf16 %v68_v47, %v64_v46  ;;  %v63_v53 = vld [vmem:[%s1419_s1 + $0x100] sm:$0xff]  ;;  %v65_v55 = vld [vmem:[%s1419_s1 + $0x110] sm:$0xff]  ;;  %v828_v56 = vpack.c.bf16 %v70_v49, %v66_v48  ;;  %v72_v58 = vld [vmem:[%s1419_s1 + $0x148] sm:$0xff] }
   0xe   :  { %787 = vmatpush1.bf16.msra.mxu0 %v786_v34  ;;  %v67_v54 = vld [vmem:[%s1419_s1 + $0x120] sm:$0xff]  ;;  %v69_v57 = vld [vmem:[%s1419_s1 + $0x130] sm:$0xff]  ;;  %v76_v59 = vld [vmem:[%s1419_s1 + $0x168] sm:$0xff] }
   0xf   :  { %823 = vmatpush1.bf16.msra.mxu1 %v822_v38  ;;  %789 = vmatprep.subr.bf16.mxu0 %v788_v39  ;;  %v74_v60 = vld [vmem:[%s1419_s1 + $0x158] sm:$0xff]  ;;  %v794_v62 = vpack.c.bf16 %v67_v54, %v63_v53  ;;  %v830_v63 = vpack.c.bf16 %v69_v57, %v65_v55  ;;  %v796_v0 = vpack.c.bf16 %v76_v59, %v72_v58  ;;  %v71_v1 = vld [vmem:[%s1419_s1 + $0x140] sm:$0xff]  ;;  %v73_v3 = vld [vmem:[%s1419_s1 + $0x150] sm:$0xff]  ;;  %v105_v53 = vlaneseq }
  0x10   :  { %825 = vmatprep.subr.bf16.mxu1 %v824_v43  ;;  %v78_v61 = vld [vmem:[%s1419_s1 + $0x178] sm:$0xff]  ;;  %v75_v2 = vld [vmem:[%s1419_s1 + $0x160] sm:$0xff]  ;;  %v77_v5 = vld [vmem:[%s1419_s1 + $0x170] sm:$0xff] }
  0x11   :  { %v832_v4 = vpack.c.bf16 %v78_v61, %v74_v60  ;;  %v80_v6 = vld [vmem:[%s1419_s1 + $0x188] sm:$0xff]  ;;  %v82_v8 = vld [vmem:[%s1419_s1 + $0x198] sm:$0xff]  ;;  %v798_v10 = vpack.c.bf16 %v75_v2, %v71_v1  ;;  %v834_v11 = vpack.c.bf16 %v77_v5, %v73_v3  ;;  %v79_v13 = vld [vmem:[%s1419_s1 + $0x180] sm:$0xff]  ;;  %v106_v54 = vshrl.u32 %v105_v53, 7 }
  0x12   :  { %791 = vmatpush1.bf16.msra.mxu0 %v790_v50  ;;  %v84_v7 = vld [vmem:[%s1419_s1 + $0x1a8] sm:$0xff]  ;;  %v86_v9 = vld [vmem:[%s1419_s1 + $0x1b8] sm:$0xff]  ;;  %v83_v14 = vld [vmem:[%s1419_s1 + $0x1a0] sm:$0xff] }
  0x13   :  { %827 = vmatpush1.bf16.msra.mxu1 %v826_v51  ;;  %793 = vmatprep.subr.bf16.mxu0 %v792_v52  ;;  %v800_v12 = vpack.c.bf16 %v84_v7, %v80_v6  ;;  %v81_v15 = vld [vmem:[%s1419_s1 + $0x190] sm:$0xff]  ;;  %v836_v16 = vpack.c.bf16 %v86_v9, %v82_v8  ;;  %v88_v18 = vld [vmem:[%s1419_s1 + $0x1c8] sm:$0xff]  ;;  %v90_v20 = vld [vmem:[%s1419_s1 + $0x1d8] sm:$0xff]  ;;  %v802_v22 = vpack.c.bf16 %v83_v14, %v79_v13  ;;  %v929_v52 = vmov 0.0  }
  0x14   :  { %829 = vmatprep.subr.bf16.mxu1 %v828_v56  ;;  %v85_v17 = vld [vmem:[%s1419_s1 + $0x1b0] sm:$0xff]  ;;  %v92_v19 = vld [vmem:[%s1419_s1 + $0x1e8] sm:$0xff]  ;;  %v94_v21 = vld [vmem:[%s1419_s1 + $0x1f8] sm:$0xff]  ;;  %v107_v55 = vsub.s32 0, %v106_v54  ;;  %v111_v57 = vsub.s32 1, %v106_v54  ;;  %v115_v58 = vsub.s32 2, %v106_v54 }
  0x15   :  { %v24_v23 = vld [vmem:[%s1420_s0 + $0x8] sm:$0xff]  ;;  %v838_v24 = vpack.c.bf16 %v85_v17, %v81_v15  ;;  %v804_v25 = vpack.c.bf16 %v92_v19, %v88_v18  ;;  %v87_v26 = vld [vmem:[%s1419_s1 + $0x1c0] sm:$0xff]  ;;  %v89_v28 = vld [vmem:[%s1419_s1 + $0x1d0] sm:$0xff]  ;;  %v840_v29 = vpack.c.bf16 %v94_v21, %v90_v20  ;;  %v119_v59 = vsub.s32 3, %v106_v54 }
  0x16   :  { %795 = vmatpush1.bf16.msra.mxu0 %v794_v62  ;;  %v91_v27 = vld [vmem:[%s1419_s1 + $0x1e0] sm:$0xff]  ;;  %v93_v30 = vld [vmem:[%s1419_s1 + $0x1f0] sm:$0xff]  ;;  %v96_v31 = vld [vmem:[%s1419_s1 + $0x208] sm:$0xff]  ;;  %695 = vmatprep.mubr.msk.f32.mxu0 %vm125_vm0, %v24_v23 }
  0x17   :  { %831 = vmatpush1.bf16.msra.mxu1 %v830_v63  ;;  %797 = vmatprep.subr.bf16.mxu0 %v796_v0  ;;  %v100_v32 = vld [vmem:[%s1419_s1 + $0x228] sm:$0xff]  ;;  %v98_v33 = vld [vmem:[%s1419_s1 + $0x218] sm:$0xff]  ;;  %v806_v35 = vpack.c.bf16 %v91_v27, %v87_v26  ;;  %v842_v36 = vpack.c.bf16 %v93_v30, %v89_v28  ;;  %v95_v38 = vld [vmem:[%s1419_s1 + $0x200] sm:$0xff] }
  0x18   :  { %833 = vmatprep.subr.bf16.mxu1 %v832_v4  ;;  %v102_v34 = vld [vmem:[%s1419_s1 + $0x238] sm:$0xff]  ;;  %699 = vmatprep.mubr.msk.f32.mxu1 %vm125_vm0, %v24_v23  ;;  %v808_v37 = vpack.c.bf16 %v100_v32, %v96_v31  ;;  %v99_v39 = vld [vmem:[%s1419_s1 + $0x220] sm:$0xff]  ;;  %v97_v41 = vld [vmem:[%s1419_s1 + $0x210] sm:$0xff] }
  0x19   :  { %v844_v40 = vpack.c.bf16 %v102_v34, %v98_v33  ;;  %v101_v42 = vld [vmem:[%s1419_s1 + $0x230] sm:$0xff]  ;;  %v810_v43 = vpack.c.bf16 %v99_v39, %v95_v38  ;;  %v23_v45 = vld [vmem:[%s1420_s0] sm:$0xff]  ;;  %v26_v46 = vld [vmem:[%s1420_s0 + $0x18] sm:$0xff] }
  0x1a   :  { %799 = vmatpush1.bf16.msra.mxu0 %v798_v10  ;;  %v846_v44 = vpack.c.bf16 %v101_v42, %v97_v41  ;;  %v25_v47 = vld [vmem:[%s1420_s0 + $0x10] sm:$0xff]  ;;  %v28_v48 = vld [vmem:[%s1420_s0 + $0x28] sm:$0xff]  ;;  %v27_v49 = vld [vmem:[%s1420_s0 + $0x20] sm:$0xff] }
  0x1b   :  { %835 = vmatpush1.bf16.msra.mxu1 %v834_v11  ;;  %801 = vmatprep.subr.bf16.mxu0 %v800_v12  ;;  %v30_v50 = vld [vmem:[%s1420_s0 + $0x38] sm:$0xff]  ;;  %v29_v51 = vld [vmem:[%s1420_s0 + $0x30] sm:$0xff]  ;;  %v103_v56 = vld [vmem:[%s1421_s2] sm:$0xf] }
  0x1c   :  { %837 = vmatprep.subr.bf16.mxu1 %v836_v16  ;;  %v108_v60 = vrot.slane %v103_v56, %v107_v55  ;;  %v112_v62 = vrot.slane %v103_v56, %v111_v57  ;;  %v116_v63 = vrot.slane %v103_v56, %v115_v58  ;;  %v120_v2 = vrot.slane %v103_v56, %v119_v59  ;;  %v528_v53 = vld [vmem:[%s1422_s4 + $0x188] sm:$0xff] }
  0x1e   :  { %803 = vmatpush1.bf16.msra.mxu0 %v802_v22 }
  0x1f   :  { %839 = vmatpush1.bf16.msra.mxu1 %v838_v24  ;;  %805 = vmatprep.subr.bf16.mxu0 %v804_v25 }
  0x20   :  { %841 = vmatprep.subr.bf16.mxu1 %v840_v29 }
  0x22   :  { %807 = vmatpush1.bf16.msra.mxu0 %v806_v35 }
  0x23   :  { %843 = vmatpush1.bf16.msra.mxu1 %v842_v36  ;;  %809 = vmatprep.subr.bf16.mxu0 %v808_v37 }
  0x24   :  { %845 = vmatprep.subr.bf16.mxu1 %v844_v40 }
  0x26   :  { %811 = vmatpush1.bf16.msra.mxu0 %v810_v43 }
  0x27   :  { %847 = vmatpush1.bf16.msra.mxu1 %v846_v44 }
  0x29   :  { %203 = vmatmul.mubr.f32.vlgmr.msra.gmra.mrb[0].mxu0 %v23_v45 }
  0x2a   :  { %292 = vmatmul.mubr.f32.vlgmr.msra.gmra.mrb[0].mxu1 %v23_v45  ;;  %696 = vmatprep.mubr.msk.f32.mxu0 %vm125_vm0, %v26_v46 }
  0x2b   :  { %700 = vmatprep.mubr.msk.f32.mxu1 %vm125_vm0, %v26_v46  ;;  %v495_v46 = vld [vmem:[%s1422_s4 + $0x80] sm:$0xff] }
  0x2d   :  { %209 = vmatmul.mubr.f32.gmra.mrb[2].mxu0 %v25_v47 }
  0x2e   :  { %298 = vmatmul.mubr.f32.gmra.mrb[2].mxu1 %v25_v47  ;;  %697 = vmatprep.mubr.msk.f32.mxu0 %vm125_vm0, %v28_v48  ;;  %v496_v47 = vld [vmem:[%s1422_s4 + $0x88] sm:$0xff] }
  0x2f   :  { %701 = vmatprep.mubr.msk.f32.mxu1 %vm125_vm0, %v28_v48  ;;  %v864_v59 = vpack.c.bf16 %v496_v47, %v495_v46  ;;  %v487_v46 = vld [vmem:[%s1422_s4 + $0x40] sm:$0xff]  ;;  %v488_v47 = vld [vmem:[%s1422_s4 + $0x48] sm:$0xff] }
  0x31   :  { %215 = vmatmul.mubr.f32.gmra.mrb[4].mxu0 %v27_v49 }
  0x32   :  { %304 = vmatmul.mubr.f32.gmra.mrb[4].mxu1 %v27_v49  ;;  %698 = vmatprep.mubr.msk.f32.mxu0 %vm125_vm0, %v30_v50 }
  0x33   :  { %702 = vmatprep.mubr.msk.f32.mxu1 %vm125_vm0, %v30_v50 }
  0x35   :  { %221 = vmatmul.mubr.f32.gmra.mrb[6].mxu0 %v29_v51 }
  0x36   :  { %310 = vmatmul.mubr.f32.gmra.mrb[6].mxu1 %v29_v51  ;;  %401 = vmatprep.mubr.f32.mxu0 %v929_v52 }
  0x37   :  { %472 = vmatprep.mubr.f32.mxu1 %v929_v52  ;;  %v527_v52 = vld [vmem:[%s1422_s4 + $0x180] sm:$0xff] }
  0xfc   :  { %v204_v61 = vpop.f32.mrb[0].mxu0 }
  0xfd   :  { %v206_v0 = vpop.f32.mrb[1].mxu0  ;;  %v293_v1 = vpop.f32.mrb[0].mxu1  ;;  %v205_v4 = vadd.f32 %v204_v61, %v108_v60  ;;  %v480_v61 = vld [vmem:[%s1422_s4 + $0x8] sm:$0xff] }
  0xfe   :  { %v295_v3 = vpop.f32.mrb[1].mxu1  ;;  %v207_v5 = vadd.f32 %v206_v0, %v112_v62  ;;  %v294_v6 = vadd.f32 %v293_v1, %v116_v63  ;;  %v896_v0 = vpack.c.bf16 %v528_v53, %v527_v52  ;;  %v512_v1 = vld [vmem:[%s1422_s4 + $0x108] sm:$0xff]  ;;  %v506_v52 = vld [vmem:[%s1422_s4 + $0xd8] sm:$0xff]  ;;  %v537_v53 = vld [vmem:[%s1422_s4 + $0x1d0] sm:$0xff] }
  0xff   :  { %v296_v8 = vadd.f32 %v295_v3, %v120_v2  ;;  %v316_v15 = vmax.f32 %v205_v4, 0.0  ;;  %v498_v3 = vld [vmem:[%s1422_s4 + $0x98] sm:$0xff]  ;;  %v529_v4 = vld [vmem:[%s1422_s4 + $0x190] sm:$0xff] }
 0x100   :  { %v210_v7 = vpop.f32.mrb[2].mxu0  ;;  %v317_v18 = vmax.f32 %v207_v5, 0.0  ;;  %v318_v19 = vmax.f32 %v294_v6, 0.0  ;;  %v530_v5 = vld [vmem:[%s1422_s4 + $0x198] sm:$0xff]  ;;  %v332_v6 = vld [vmem:[%s1423_s3] sm:$0xff] }
 0x101   :  { %v211_v9 = vadd.f32 %v210_v7, %v108_v60  ;;  %v299_v10 = vpop.f32.mrb[2].mxu1  ;;  %v212_v11 = vpop.f32.mrb[3].mxu0  ;;  %v319_v23 = vmax.f32 %v296_v8, 0.0 }
 0x102   :  { %v300_v12 = vadd.f32 %v299_v10, %v116_v63  ;;  %v213_v13 = vadd.f32 %v212_v11, %v112_v62  ;;  %v301_v14 = vpop.f32.mrb[3].mxu1  ;;  %v481_v10 = vld [vmem:[%s1422_s4 + $0x10] sm:$0xff]  ;;  %v482_v11 = vld [vmem:[%s1422_s4 + $0x18] sm:$0xff] }
 0x103   :  { %v320_v16 = vmax.f32 %v211_v9, 0.0  ;;  %v302_v17 = vadd.f32 %v301_v14, %v120_v2  ;;  %v514_v14 = vld [vmem:[%s1422_s4 + $0x118] sm:$0xff] }
 0x104   :  { %v322_v20 = vmax.f32 %v300_v12, 0.0  ;;  %v321_v21 = vmax.f32 %v213_v13, 0.0  ;;  %v216_v22 = vpop.f32.mrb[4].mxu0  ;;  %v513_v12 = vld [vmem:[%s1422_s4 + $0x110] sm:$0xff]  ;;  %v900_v13 = vpack.c.bf16 %v530_v5, %v529_v4 }
 0x105   :  { %v850_v24 = vpack.c.bf16 %v320_v16, %v316_v15  ;;  %v323_v25 = vmax.f32 %v302_v17, 0.0  ;;  %v218_v26 = vpop.f32.mrb[5].mxu0  ;;  %v305_v27 = vpop.f32.mrb[4].mxu1  ;;  %v217_v32 = vadd.f32 %v216_v22, %v108_v60  ;;  %v499_v15 = vld [vmem:[%s1422_s4 + $0xa0] sm:$0xff]  ;;  %v500_v16 = vld [vmem:[%s1422_s4 + $0xa8] sm:$0xff] }
 0x106   :  { %v858_v28 = vpack.c.bf16 %v322_v20, %v318_v19  ;;  %v848_v29 = vpack.c.bf16 %v321_v21, %v317_v18  ;;  %v307_v30 = vpop.f32.mrb[5].mxu1  ;;  %v219_v33 = vadd.f32 %v218_v26, %v112_v62  ;;  %v306_v34 = vadd.f32 %v305_v27, %v116_v63  ;;  %v531_v17 = vld [vmem:[%s1422_s4 + $0x1a0] sm:$0xff]  ;;  %v532_v18 = vld [vmem:[%s1422_s4 + $0x1a8] sm:$0xff]  ;;  %v501_v27 = vld [vmem:[%s1422_s4 + $0xb0] sm:$0xff] }
 0x107   :  { %v856_v31 = vpack.c.bf16 %v323_v25, %v319_v23  ;;  %v308_v36 = vadd.f32 %v307_v30, %v120_v2  ;;  %v324_v43 = vmax.f32 %v217_v32, 0.0  ;;  %v870_v19 = vpack.c.bf16 %v482_v11, %v481_v10  ;;  %v483_v22 = vld [vmem:[%s1422_s4 + $0x20] sm:$0xff]  ;;  %v484_v23 = vld [vmem:[%s1422_s4 + $0x28] sm:$0xff]  ;;  %v534_v30 = vld [vmem:[%s1422_s4 + $0x1b8] sm:$0xff] }
 0x108   :  { %v222_v35 = vpop.f32.mrb[6].mxu0  ;;  %849 = vmatprep.subr.bf16.mxu0 %v848_v29  ;;  %v325_v48 = vmax.f32 %v219_v33, 0.0  ;;  %v326_v49 = vmax.f32 %v306_v34, 0.0  ;;  %v902_v20 = vpack.c.bf16 %v514_v14, %v513_v12  ;;  %v872_v21 = vpack.c.bf16 %v500_v16, %v499_v15  ;;  %v516_v26 = vld [vmem:[%s1422_s4 + $0x128] sm:$0xff]  ;;  %v533_v29 = vld [vmem:[%s1422_s4 + $0x1b0] sm:$0xff]  ;;  %v510_v12 = vld [vmem:[%s1422_s4 + $0xf8] sm:$0xff] }
 0x109   :  { %v223_v37 = vadd.f32 %v222_v35, %v108_v60  ;;  %v311_v38 = vpop.f32.mrb[6].mxu1  ;;  %857 = vmatprep.subr.bf16.mxu1 %v856_v31  ;;  %v224_v39 = vpop.f32.mrb[7].mxu0  ;;  %851 = vmatpush1.bf16.msra.mxu0 %v850_v24  ;;  %v327_v54 = vmax.f32 %v308_v36, 0.0  ;;  %v479_v60 = vld [vmem:[%s1422_s4] sm:$0xff]  ;;  %v904_v25 = vpack.c.bf16 %v532_v18, %v531_v17  ;;  %v874_v31 = vpack.c.bf16 %v484_v23, %v483_v22  ;;  %v485_v34 = vld [vmem:[%s1422_s4 + $0x30] sm:$0xff]  ;;  %v486_v35 = vld [vmem:[%s1422_s4 + $0x38] sm:$0xff] }
 0x10a   :  { %v312_v40 = vadd.f32 %v311_v38, %v116_v63  ;;  %v225_v41 = vadd.f32 %v224_v39, %v112_v62  ;;  %v313_v42 = vpop.f32.mrb[7].mxu1  ;;  %859 = vmatpush1.bf16.msra.mxu1 %v858_v28  ;;  %v511_v62 = vld [vmem:[%s1422_s4 + $0x100] sm:$0xff]  ;;  %v866_v7 = vpack.c.bf16 %v480_v61, %v479_v60  ;;  %v502_v28 = vld [vmem:[%s1422_s4 + $0xb8] sm:$0xff]  ;;  %v517_v36 = vld [vmem:[%s1422_s4 + $0x130] sm:$0xff] }
 0x10b   :  { %v328_v44 = vmax.f32 %v223_v37, 0.0  ;;  %v314_v45 = vadd.f32 %v313_v42, %v120_v2  ;;  %v497_v2 = vld [vmem:[%s1422_s4 + $0x90] sm:$0xff]  ;;  %v898_v8 = vpack.c.bf16 %v512_v1, %v511_v62  ;;  %v515_v24 = vld [vmem:[%s1422_s4 + $0x120] sm:$0xff]  ;;  %v876_v33 = vpack.c.bf16 %v502_v28, %v501_v27  ;;  %v518_v38 = vld [vmem:[%s1422_s4 + $0x138] sm:$0xff] }
 0x10c   :  { %v330_v50 = vmax.f32 %v312_v40, 0.0  ;;  %v329_v51 = vmax.f32 %v225_v41, 0.0  ;;  %v868_v9 = vpack.c.bf16 %v498_v3, %v497_v2  ;;  %v906_v32 = vpack.c.bf16 %v516_v26, %v515_v24  ;;  %v503_v39 = vld [vmem:[%s1422_s4 + $0xc0] sm:$0xff]  ;;  %v504_v40 = vld [vmem:[%s1422_s4 + $0xc8] sm:$0xff]  ;;  %v521_v60 = vld [vmem:[%s1422_s4 + $0x150] sm:$0xff] }
 0x10d   :  { %v854_v55 = vpack.c.bf16 %v328_v44, %v324_v43  ;;  %v331_v56 = vmax.f32 %v314_v45, 0.0  ;;  %v908_v37 = vpack.c.bf16 %v534_v30, %v533_v29  ;;  %v535_v41 = vld [vmem:[%s1422_s4 + $0x1c0] sm:$0xff]  ;;  %v536_v42 = vld [vmem:[%s1422_s4 + $0x1c8] sm:$0xff]  ;;  %v878_v43 = vpack.c.bf16 %v486_v35, %v485_v34  ;;  %v522_v62 = vld [vmem:[%s1422_s4 + $0x158] sm:$0xff] }
 0x10e   :  { %v862_v57 = vpack.c.bf16 %v330_v50, %v326_v49  ;;  %v852_v58 = vpack.c.bf16 %v329_v51, %v325_v48  ;;  %v910_v44 = vpack.c.bf16 %v518_v38, %v517_v36  ;;  %v880_v45 = vpack.c.bf16 %v504_v40, %v503_v39  ;;  %v519_v48 = vld [vmem:[%s1422_s4 + $0x140] sm:$0xff]  ;;  %v520_v50 = vld [vmem:[%s1422_s4 + $0x148] sm:$0xff]  ;;  %v505_v51 = vld [vmem:[%s1422_s4 + $0xd0] sm:$0xff] }
 0x10f   :  { %v860_v63 = vpack.c.bf16 %v331_v56, %v327_v54  ;;  %v912_v49 = vpack.c.bf16 %v536_v42, %v535_v41  ;;  %v538_v54 = vld [vmem:[%s1422_s4 + $0x1d8] sm:$0xff]  ;;  %v914_v56 = vpack.c.bf16 %v520_v50, %v519_v48  ;;  %v539_v1 = vld [vmem:[%s1422_s4 + $0x1e0] sm:$0xff]  ;;  %v540_v2 = vld [vmem:[%s1422_s4 + $0x1e8] sm:$0xff]  ;;  %v918_v4 = vpack.c.bf16 %v522_v62, %v521_v60 }
 0x110   :  { %853 = vmatprep.subr.bf16.mxu0 %v852_v58  ;;  %v489_v58 = vld [vmem:[%s1422_s4 + $0x50] sm:$0xff]  ;;  %v916_v61 = vpack.c.bf16 %v538_v54, %v537_v53  ;;  %v524_v10 = vld [vmem:[%s1422_s4 + $0x168] sm:$0xff]  ;;  %v542_v17 = vld [vmem:[%s1422_s4 + $0x1f8] sm:$0xff] }
 0x111   :  { %861 = vmatprep.subr.bf16.mxu1 %v860_v63  ;;  %855 = vmatpush1.bf16.msra.mxu0 %v854_v55  ;;  %v882_v55 = vpack.c.bf16 %v488_v47, %v487_v46  ;;  %v507_v63 = vld [vmem:[%s1422_s4 + $0xe0] sm:$0xff]  ;;  %v509_v11 = vld [vmem:[%s1422_s4 + $0xf0] sm:$0xff]  ;;  %v526_v23 = vld [vmem:[%s1422_s4 + $0x178] sm:$0xff] }
 0x112   :  { %863 = vmatpush1.bf16.msra.mxu1 %v862_v57  ;;  %865 = vmatprep.subr.bf16.mxu0 %v864_v59  ;;  %v884_v57 = vpack.c.bf16 %v506_v52, %v505_v51  ;;  %v490_v59 = vld [vmem:[%s1422_s4 + $0x58] sm:$0xff]  ;;  %v892_v15 = vpack.c.bf16 %v510_v12, %v509_v11  ;;  %v541_v16 = vld [vmem:[%s1422_s4 + $0x1f0] sm:$0xff]  ;;  %v705_v30 = vld [vmem:[%s1424_s5] ss:$0 sm:$0xff] }
 0x113   :  { %897 = vmatprep.subr.bf16.mxu1 %v896_v0  ;;  %v508_v0 = vld [vmem:[%s1422_s4 + $0xe8] sm:$0xff]  ;;  %v886_v3 = vpack.c.bf16 %v490_v59, %v489_v58  ;;  %v493_v18 = vld [vmem:[%s1422_s4 + $0x70] sm:$0xff] }
 0x114   :  { %703 = vmatmul.mubr.msk.f32.vlgmr.msra.gmra.mrb[8].mxu0 %vm333_vm1, %v332_v6  ;;  %v888_v5 = vpack.c.bf16 %v508_v0, %v507_v63 }
 0x115   :  { %704 = vmatmul.mubr.msk.f32.vlgmr.msra.gmra.mrb[8].mxu1 %vm333_vm1, %v332_v6  ;;  %867 = vmatpush3.bf16.msra.mxu0 %v866_v7  ;;  %v491_v6 = vld [vmem:[%s1422_s4 + $0x60] sm:$0xff]  ;;  %v492_v7 = vld [vmem:[%s1422_s4 + $0x68] sm:$0xff] }
 0x116   :  { %899 = vmatpush3.bf16.msra.mxu1 %v898_v8  ;;  %869 = vmatprep.subr.bf16.mxu0 %v868_v9  ;;  %v523_v8 = vld [vmem:[%s1422_s4 + $0x160] sm:$0xff]  ;;  %v920_v9 = vpack.c.bf16 %v540_v2, %v539_v1 }
 0x117   :  { %901 = vmatprep.subr.bf16.mxu1 %v900_v13  ;;  %v890_v13 = vpack.c.bf16 %v492_v7, %v491_v6  ;;  %v922_v14 = vpack.c.bf16 %v524_v10, %v523_v8 }
 0x119   :  { %871 = vmatpush3.bf16.msra.mxu0 %v870_v19  ;;  %v494_v19 = vld [vmem:[%s1422_s4 + $0x78] sm:$0xff] }
 0x11a   :  { %903 = vmatpush3.bf16.msra.mxu1 %v902_v20  ;;  %873 = vmatprep.subr.bf16.mxu0 %v872_v21  ;;  %v924_v20 = vpack.c.bf16 %v542_v17, %v541_v16  ;;  %v525_v21 = vld [vmem:[%s1422_s4 + $0x170] sm:$0xff]  ;;  %v894_v22 = vpack.c.bf16 %v494_v19, %v493_v18 }
 0x11b   :  { %905 = vmatprep.subr.bf16.mxu1 %v904_v25  ;;  %v926_v24 = vpack.c.bf16 %v526_v23, %v525_v21 }
 0x11d   :  { %875 = vmatpush3.bf16.msra.mxu0 %v874_v31 }
 0x11e   :  { %907 = vmatpush3.bf16.msra.mxu1 %v906_v32  ;;  %877 = vmatprep.subr.bf16.mxu0 %v876_v33 }
 0x11f   :  { %909 = vmatprep.subr.bf16.mxu1 %v908_v37 }
 0x121   :  { %879 = vmatpush3.bf16.msra.mxu0 %v878_v43 }
 0x122   :  { %911 = vmatpush3.bf16.msra.mxu1 %v910_v44  ;;  %881 = vmatprep.subr.bf16.mxu0 %v880_v45 }
 0x123   :  { %913 = vmatprep.subr.bf16.mxu1 %v912_v49 }
 0x125   :  { %883 = vmatpush3.bf16.msra.mxu0 %v882_v55 }
 0x126   :  { %915 = vmatpush3.bf16.msra.mxu1 %v914_v56  ;;  %885 = vmatprep.subr.bf16.mxu0 %v884_v57 }
 0x127   :  { %917 = vmatprep.subr.bf16.mxu1 %v916_v61 }
 0x129   :  { %887 = vmatpush3.bf16.msra.mxu0 %v886_v3 }
 0x12a   :  { %919 = vmatpush3.bf16.msra.mxu1 %v918_v4  ;;  %889 = vmatprep.subr.bf16.mxu0 %v888_v5 }
 0x12b   :  { %921 = vmatprep.subr.bf16.mxu1 %v920_v9 }
 0x12d   :  { %891 = vmatpush3.bf16.msra.mxu0 %v890_v13 }
 0x12e   :  { %923 = vmatpush3.bf16.msra.mxu1 %v922_v14  ;;  %893 = vmatprep.subr.bf16.mxu0 %v892_v15 }
 0x12f   :  { %925 = vmatprep.subr.bf16.mxu1 %v924_v20 }
 0x131   :  { %895 = vmatpush3.bf16.msra.mxu0 %v894_v22 }
 0x132   :  { %927 = vmatpush3.bf16.msra.mxu1 %v926_v24 }
 0x1e7   :  { %v403_v25 = vpop.f32.mrb[8].mxu0 }
 0x1e8   :  { %v405_v26 = vpop.f32.mrb[9].mxu0  ;;  %v474_v27 = vpop.f32.mrb[8].mxu1 }
 0x1e9   :  { %614 = vmatprep.mubr.f32.mxu0 %v405_v26  ;;  %v476_v28 = vpop.f32.mrb[9].mxu1 }
 0x1ea   :  { %615 = vmatmul.mubr.f32.vlgmr.msra.gmra.mrb[10].mxu0 %v403_v25  ;;  %684 = vmatprep.mubr.f32.mxu1 %v476_v28 }
 0x1eb   :  { %685 = vmatmul.mubr.f32.vlgmr.msra.gmra.mrb[10].mxu1 %v474_v27 }
 0x2bd   :  { %v738_v29 = vpop.f32.mrb[10].mxu0 }
 0x2be   :  { %v739_v31 = vpop.f32.mrb[11].mxu0  ;;  %v773_v32 = vpop.f32.mrb[10].mxu1 }
 0x2bf   :  { %v740_v33 = vadd.f32 %v739_v31, %v738_v29  ;;  %v774_v34 = vpop.f32.mrb[11].mxu1 }
 0x2c0   :  { %v775_v35 = vadd.f32 %v774_v34, %v773_v32 }
 0x2c1   :  { %v617_v36 = vadd.f32 %v740_v33, %v705_v30 }
 0x2c3   :  { %v687_v37 = vadd.f32 %v775_v35, %v617_v36 }
 0x2c5   :  { %690 = vst [vmem:[%s1425_s6] sm:$0xff] %v687_v37 }

</bundles_post_ra>
